<compile_context>
chip_gen: v5e
topology: v5e:2x2
jax: 0.10.0
libtpu: 0.0.40
codegen_flags: <defaults>
</compile_context>

<pallas_src>
import functools

import jax
import jax.numpy as jnp
import numpy as np
from jax.experimental import pallas as pl
from jax.experimental.pallas import tpu as pltpu


def _round_up(x: int, m: int) -> int:
    return ((x + m - 1) // m) * m


def _tied_kernel(x_ref, f_ref, o_ref):
    """x_ref: (TM, TL); f_ref: (TM, 1) f32 holding keep * (1/(1-p))."""
    xf = x_ref[...].astype(jnp.float32)
    o_ref[...] = (xf * f_ref[...]).astype(o_ref.dtype)


def _untied_kernel(x_ref, bits_ref, o_ref, *, threshold, scale):
    """x_ref: (TM, TL); bits_ref: (TM, TL) uint32 random bits."""
    keep = bits_ref[...] < jnp.uint32(threshold)
    xf = x_ref[...].astype(jnp.float32)
    o_ref[...] = jnp.where(keep, xf * jnp.float32(scale), 0.0).astype(o_ref.dtype)


def dropout_nd(x, seed, *, p=0.5, tie=True, transposed=True, training=True):
    """Pallas implementation of DropoutNd.forward.

    x: (batch, dim, lengths...) if transposed=True, else (batch, lengths..., dim).
    """
    if p < 0 or p >= 1:
        raise ValueError(f"dropout probability has to be in [0, 1), but got {p}")
    if not training or p == 0.0:
        return x

    if not transposed:
        # 'b ... d -> b d ...'
        x = jnp.moveaxis(x, -1, 1)

    orig_shape = x.shape
    B, C = x.shape[0], x.shape[1]
    spatial = x.shape[2:]
    L = int(np.prod(spatial)) if len(spatial) > 0 else 1
    rows = B * C
    xf = x.reshape(rows, L)

    itemsize = jnp.dtype(xf.dtype).itemsize
    sub = 8 if itemsize >= 4 else (16 if itemsize == 2 else 32)
    scale = 1.0 / (1.0 - p)

    # ---- lane-dense tiling -------------------------------------------------
    rows_sub = _round_up(rows, sub)
    l_128 = _round_up(L, 128)
    TM = rows_sub if rows_sub <= 128 else 128
    TL = l_128 if l_128 <= 2048 else 2048
    rows_pad = _round_up(rows_sub, TM)
    L_pad = _round_up(l_128, TL)

    pad_r = rows_pad - rows
    pad_l = L_pad - L
    if pad_r or pad_l:
        xf = jnp.pad(xf, ((0, pad_r), (0, pad_l)))

    grid = (rows_pad // TM, L_pad // TL)
    key = jax.random.PRNGKey(seed)

    x_spec = pl.BlockSpec((TM, TL), lambda i, j: (i, j))
    o_spec = pl.BlockSpec((TM, TL), lambda i, j: (i, j))
    compiler_params = pltpu.CompilerParams(
        dimension_semantics=("parallel", "parallel"),
    )

    if tie:
        # One Bernoulli draw per (b, c); fold keep * scale into a (rows, 1)
        # f32 factor so the kernel does a single broadcast multiply.
        keep = jax.random.uniform(key, (rows,), dtype=jnp.float32) < (1.0 - p)
        factor = keep.astype(jnp.float32) * jnp.float32(scale)
        factor = factor.reshape(rows, 1)
        if pad_r:
            factor = jnp.pad(factor, ((0, pad_r), (0, 0)))

        cost = pl.CostEstimate(
            flops=2 * rows_pad * L_pad,
            transcendentals=0,
            bytes_accessed=2 * rows_pad * L_pad * itemsize + rows_pad * 4,
        )
        out = pl.pallas_call(
            _tied_kernel,
            out_shape=jax.ShapeDtypeStruct((rows_pad, L_pad), xf.dtype),
            grid=grid,
            in_specs=[x_spec, pl.BlockSpec((TM, 1), lambda i, j: (i, 0))],
            out_specs=o_spec,
            compiler_params=compiler_params,
            cost_estimate=cost,
        )(xf, factor)
    else:
        # Independent draw per element: raw uint32 bits, compared in-kernel
        # against an integer threshold (no float conversion of the bits).
        bits = jax.random.bits(key, (rows, L), dtype=jnp.uint32)
        if pad_r or pad_l:
            bits = jnp.pad(bits, ((0, pad_r), (0, pad_l)))
        threshold = min(int((1.0 - p) * float(2**32)), 2**32 - 1)
        kernel = functools.partial(
            _untied_kernel, threshold=threshold, scale=scale
        )
        cost = pl.CostEstimate(
            flops=3 * rows_pad * L_pad,
            transcendentals=0,
            bytes_accessed=2 * rows_pad * L_pad * itemsize + rows_pad * L_pad * 4,
        )
        out = pl.pallas_call(
            kernel,
            out_shape=jax.ShapeDtypeStruct((rows_pad, L_pad), xf.dtype),
            grid=grid,
            in_specs=[x_spec, pl.BlockSpec((TM, TL), lambda i, j: (i, j))],
            out_specs=o_spec,
            compiler_params=compiler_params,
            cost_estimate=cost,
        )(xf, bits)

    out = out[:rows, :L].reshape(orig_shape)
    if not transposed:
        # 'b d ... -> b ... d'
        out = jnp.moveaxis(out, 1, -1)
    return out


if __name__ == "__main__":
    key = jax.random.PRNGKey(0)
    B, C, H, W = 2, 4, 16, 16
    p = 0.5
    scale = 1.0 / (1.0 - p)

    x = jax.random.normal(key, (B, C, H, W), dtype=jnp.float32)
    x_np = np.asarray(x)

    # --- tied mask (Dropout2d-style): one mask value per (b, c) -------------
    y = dropout_nd(x, seed=1234, p=p, tie=True, transposed=True, training=True)
    y = jax.block_until_ready(y)
    y_np = np.asarray(y)
    assert y_np.shape == x_np.shape and y_np.dtype == x_np.dtype
    for b in range(B):
        for c in range(C):
            sl = y_np[b, c]
            if np.allclose(sl, 0.0):
                continue
            assert np.allclose(sl, x_np[b, c] * scale, rtol=1e-5, atol=1e-5), (
                f"mask not tied / wrong scale at (b={b}, c={c})"
            )

    # --- untied (elementwise) mask ------------------------------------------
    y2 = dropout_nd(x, seed=42, p=p, tie=False, transposed=True, training=True)
    y2 = jax.block_until_ready(y2)
    y2_np = np.asarray(y2)
    kept = y2_np != 0.0
    assert kept.any() and (~kept).any(), "untied mask degenerate"
    assert np.allclose(y2_np[kept], x_np[kept] * scale, rtol=1e-5, atol=1e-5)

    # --- non-transposed (channels-last) layout ------------------------------
    x_nt = jnp.moveaxis(x, 1, -1)  # (B, H, W, C)
    y3 = dropout_nd(x_nt, seed=1234, p=p, tie=True, transposed=False, training=True)
    y3 = jax.block_until_ready(y3)
    assert np.asarray(y3).shape == x_nt.shape

    # --- eval mode is identity ----------------------------------------------
    y_eval = dropout_nd(x, seed=1234, p=p, training=False)
    assert np.allclose(np.asarray(y_eval), x_np)

    print("KERNEL_OK")
</pallas_src>

<mosaic_0001>
module attributes {stable_mosaic.version = 11 : i64} {
  func.func @_tied_kernel(%arg0: i32, %arg1: i32, %arg2: memref<8x256xf32, #tpu.memory_space<vmem>>, %arg3: memref<8x1xf32, #tpu.memory_space<vmem>>, %arg4: memref<8x256xf32, #tpu.memory_space<vmem>>) attributes {dimension_semantics = [#tpu.dimension_semantics<parallel>, #tpu.dimension_semantics<parallel>], iteration_bounds = array<i64: 1, 1>, scalar_prefetch = 0 : i64, scratch_operands = 0 : i64, tpu.core_type = #tpu.core_type<tc>, window_params = [{transform_indices = @transform_0, window_bounds = array<i64: 8, 256>}, {transform_indices = @transform_1, window_bounds = array<i64: 8, 1>}, {transform_indices = @transform_2, window_bounds = array<i64: 8, 256>}]} {
    %c0 = arith.constant 0 : index
    %c0_0 = arith.constant 0 : index
    %0 = vector.load %arg2[%c0, %c0_0] : memref<8x256xf32, #tpu.memory_space<vmem>>, vector<8x256xf32>
    %c0_1 = arith.constant 0 : index
    %c0_2 = arith.constant 0 : index
    %1 = vector.load %arg3[%c0_1, %c0_2] : memref<8x1xf32, #tpu.memory_space<vmem>>, vector<8x1xf32>
    %2 = vector.broadcast %1 : vector<8x1xf32> to vector<8x256xf32>
    %3 = arith.mulf %0, %2 : vector<8x256xf32>
    %c0_3 = arith.constant 0 : index
    %c0_4 = arith.constant 0 : index
    %4 = vector.load %arg4[%c0_3, %c0_4] : memref<8x256xf32, #tpu.memory_space<vmem>>, vector<8x256xf32>
    tpu.vector_store %arg4[%c0_3, %c0_4], %3 {strides = array<i32>} : memref<8x256xf32, #tpu.memory_space<vmem>>, vector<8x256xf32>,
    return
  }
  func.func @transform_0(%arg0: i32, %arg1: i32) -> (i32, i32) {
    %c0_i32 = arith.constant 0 : i32
    return %arg0, %arg1 : i32, i32
  }
  func.func @transform_1(%arg0: i32, %arg1: i32) -> (i32, i32) {
    %c0_i32 = arith.constant 0 : i32
    %c0_i32_0 = arith.constant 0 : i32
    return %arg0, %c0_i32 : i32, i32
  }
  func.func @transform_2(%arg0: i32, %arg1: i32) -> (i32, i32) {
    %c0_i32 = arith.constant 0 : i32
    return %arg0, %arg1 : i32, i32
  }
}

</mosaic_0001>

<bundles_post_ra>
// kernel: tpu_custom_call.1
= control target key start
LH: loop header
LB: loop body
LE: loop exit
PB: predicated region body
PF: predicated region fallthrough
CT: control target
= control target key end

     0   :  { %7 = vsyncpa [#allocation3], 0  ;;  %s138_s0 = inlined_call_operand.hbm [shape: f32[8,256], index: 0, kind: input, shape index: {}]   ;;  %s139_s1 = inlined_call_operand.vmem [shape: f32[8,1], index: 1, kind: input, shape index: {}]   ;;  %s140_s2 = inlined_call_operand.hbm [shape: f32[8,256], index: 2, kind: output, shape index: {}]  }
   0x1   :  { %8 = vsyncpa [#allocation4], 0  ;;  %s14_s11 = sshll.u32 %s138_s0, 4  ;;  %s111_s12 = smov [#allocation2]   ;;  %s15_s11 = int_to_ptr.hbm [resolvable:$true] %s14_s11 }
   0x2   :  { %s16_s13 = sshll.u32 %s111_s12, 4  ;;  %s17_s13 = int_to_ptr.vmem [resolvable:$true] %s16_s13 }
   0x3   :  { %19 = dma.hbm_to_vmem [thread:$0]  %s15_s11, 256, %s17_s13, [#allocation3]  }
   0x4   :  { %107 = dma.done.wait [#allocation3], 256  }
   0x5   :  { %108 = vsyncadd [#allocation3], 4294967040  ;;  %v112_v0 = vmov 0   ;;  %v28_v1 = vld [vmem:[%s139_s1] sm:$0xff]  ;;  %v27_v3 = vld [vmem:[#allocation2 + $0x8] sm:$0xff]  ;;  %s113_s16 = smov [#allocation5]  }
   0x6   :  { %58 = vset.pattern.permute.xlu0 %v112_v0  ;;  %v26_v2 = vld [vmem:[#allocation2] sm:$0xff]  ;;  %s43_s17 = sshll.u32 %s113_s16, 4  ;;  %s45_s19 = sshll.u32 %s140_s2, 4  ;;  %s44_s17 = int_to_ptr.vmem [resolvable:$true] %s43_s17  ;;  %s46_s19 = int_to_ptr.hbm [resolvable:$true] %s45_s19 }
   0x7   :  { %31 = vperm.xlu0 %58, %v28_v1  }
  0x79   :  { %v32_v4 = vpop.permute.xlu0 %31 }
  0x7a   :  { %v34_v5 = vmul.f32 %v32_v4, %v26_v2  ;;  %v35_v6 = vmul.f32 %v32_v4, %v27_v3 }
  0x7c   :  { %36 = vst [vmem:[#allocation5] sm:$0xff] %v34_v5 }
  0x7d   :  { %37 = vst [vmem:[#allocation5 + $0x8] sm:$0xff] %v35_v6 }
  0x7e   :  { %48 = dma.vmem_to_hbm [thread:$0]  %s44_s17, 256, %s46_s19, [#allocation4]  }
  0x7f   :  { %109 = dma.done.wait [#allocation4], 256  }
  0x80   :  { %110 = vsyncadd [#allocation4], 4294967040 }
  0x81   :  { %53 = vsyncpa [#allocation3], 1 }
  0x82   :  { %54 = vsyncpa [#allocation4], 1 }

</bundles_post_ra>
